<compile_context>
chip_gen: v7x
topology: tpu7x:2x2x1
jax: 0.10.0
libtpu: 0.0.40
codegen_flags: <defaults>
</compile_context>

<pallas_src>
import functools
import math

import jax
import jax.numpy as jnp
from jax.experimental import pallas as pl
from jax.experimental.pallas import tpu as pltpu

LN_EPS = 1e-5  # nn.LayerNorm default


# ------------------------------- kernels ---------------------------------- #

def _layernorm_cols(x, gamma, beta):
    """LayerNorm over the channel (sublane) axis of a (C, T) tile; gamma/beta are (C, 1)."""
    mu = jnp.mean(x, axis=0, keepdims=True)
    var = jnp.mean(jnp.square(x - mu), axis=0, keepdims=True)
    return (x - mu) * jax.lax.rsqrt(var + LN_EPS) * gamma + beta


def _masked_chunk_max(x_ref, S, tile_s):
    """Spatial max of a (C, tile_d1, tile_s) block, lane-masked for a partial last chunk."""
    x = x_ref[...].astype(jnp.float32)
    if S % tile_s != 0:                                   # static: mask only when needed
        valid = S - pl.program_id(2) * tile_s             # >= tile_s except on the last chunk
        lane = jax.lax.broadcasted_iota(jnp.int32, x.shape, dimension=x.ndim - 1)
        x = jnp.where(lane < valid, x, -jnp.inf)
    return jnp.max(x, axis=-1)                            # (C, tile_d1)


def _fused_mamba_kernel(x_ref, vecs_ref, w_ref, o_ref, acc_ref, *, S, tile_s):
    """Fused max-pool + Mamba2Block (LN -> mixer(id) -> +residual -> LN2 -> Linear).

    x_ref:    (C, tile_d1, tile_s)  channel-major slab for this (batch, d1-tile, spatial-chunk)
    vecs_ref: (C, 8)                packed [ln1_w, ln1_b, ln2_w, ln2_b, bias, 0, 0, 0]
    w_ref:    (C, C)                Linear weight, PyTorch (out, in) layout, f32
    acc_ref:  (C, tile_d1) f32      running spatial max (persists across grid axis 2)
    o_ref:    (C, tile_d1)          written on the last spatial chunk only
    """
    k = pl.program_id(2)

    @pl.when(k == 0)
    def _init():
        acc_ref[...] = jnp.full(acc_ref.shape, -jnp.inf, dtype=acc_ref.dtype)

    acc_ref[...] = jnp.maximum(acc_ref[...], _masked_chunk_max(x_ref, S, tile_s))

    @pl.when(k == pl.num_programs(2) - 1)
    def _finalize():
        p = acc_ref[...]                                   # pooled tokens (C, tile_d1)
        vecs = vecs_ref[...]                               # hoisted single read
        g1, b1 = vecs[:, 0:1], vecs[:, 1:2]
        g2, b2 = vecs[:, 2:3], vecs[:, 3:4]
        bias = vecs[:, 4:5]

        h = _layernorm_cols(p, g1, b1)
        # TODO(synk): Mamba2 mixer (mamba_ssm.Mamba2, expand=8) source unavailable -> identity.
        mixed = h
        resid = mixed + p                                  # residual_in_fp32
        h2 = _layernorm_cols(resid, g2, b2)

        # f32 Linear(C, C) in column form: out[c_out, t] = sum_cin W[c_out, c_in]*h2[c_in, t]+b.
        # It runs once per (batch, d1-tile) and hides under the next tile's DMA, so keeping it
        # in f32 removes the bf16 drift for free.
        out = jnp.dot(w_ref[...], h2, preferred_element_type=jnp.float32) + bias
        # NOTE: padded token columns of a partial last d1-tile hold garbage, but every op above
        # is column-independent and the output writeback drops the padding lanes.
        o_ref[...] = out.astype(o_ref.dtype)


def _fused_linear_kernel(x_ref, w_ref, bias_ref, o_ref, acc_ref, *, S, tile_s):
    """Fused max-pool + nn.Linear(C, C) (proj_type == 'linear')."""
    k = pl.program_id(2)

    @pl.when(k == 0)
    def _init():
        acc_ref[...] = jnp.full(acc_ref.shape, -jnp.inf, dtype=acc_ref.dtype)

    acc_ref[...] = jnp.maximum(acc_ref[...], _masked_chunk_max(x_ref, S, tile_s))

    @pl.when(k == pl.num_programs(2) - 1)
    def _finalize():
        out = jnp.dot(w_ref[...], acc_ref[...],
                      preferred_element_type=jnp.float32) + bias_ref[...]
        o_ref[...] = out.astype(o_ref.dtype)


# --------------------------- tiling heuristics ----------------------------- #

def _block_footprint_bytes(C, tile_d1, tile_s, itemsize):
    """Per-step VMEM block footprint: 2x input (double-buffered) + 2x f32 output + f32 acc."""
    return 2 * C * tile_d1 * tile_s * itemsize + 3 * C * tile_d1 * 4


def _vmem_capacity_bytes():
    """Physical VMEM of this generation (128 MiB v5e/v6e, 64 MiB v7x); conservative fallback."""
    try:
        cap = getattr(pltpu.get_tpu_info(), "vmem_capacity_bytes", None)
        if cap:
            return int(cap)
    except Exception:
        pass
    return 64 << 20


def _choose_tiles(C, d1, S, itemsize, budget_bytes, ts_pref=1024):
    """Pick (tile_d1, tile_s).

    Constraints:
      * tile_d1 must be a multiple of 128 (output lane dim) or equal d1.
      * tile_s must be a multiple of 128 or equal S (partial last chunk is masked in-kernel).
    Preference (per review): long contiguous spatial runs -- shrink tile_d1 toward 128 before
    letting tile_s drop below ~ts_pref.
    """
    def bb(td, ts):
        return _block_footprint_bytes(C, td, ts, itemsize)

    if bb(d1, S) <= budget_bytes:
        return d1, S

    d1_cands = [d1]
    td = (d1 // 128) * 128
    while td >= 128:
        if td < d1:
            d1_cands.append(td)
        td -= 128

    def best_ts(td):
        if bb(td, S) <= budget_bytes:
            return S
        ub = budget_bytes // max(2 * C * td * itemsize, 1)
        ts = min(S // 128, ub // 128) * 128
        while ts >= 128 and bb(td, ts) > budget_bytes:
            ts -= 128
        return ts if ts >= 128 else None

    ts_pref = min(S, ts_pref)
    best = None
    for td in d1_cands:                      # largest token tile first
        ts = best_ts(td)
        if ts is None:
            continue
        if ts >= ts_pref:
            return td, ts                    # long spatial run achieved; keep the biggest td
        if best is None or ts > best[1] or (ts == best[1] and td > best[0]):
            best = (td, ts)                  # otherwise prefer the longest spatial run
    if best is not None:
        return best
    # Nothing fits the requested budget: minimal legal tile; caller raises vmem_limit_bytes.
    return (d1 if d1 < 128 else 128), (S if S < 128 else 128)


# ------------------------------ host wrapper ------------------------------- #

class AixsPositionPallas:
    """JAX/Pallas re-implementation of AixsPosition (deterministic synthetic init)."""

    def __init__(self, feature_dim, proj_type="mamba", *,
                 key=jax.random.PRNGKey(42), vmem_budget_bytes=None):
        if proj_type not in ("mamba", "linear"):
            raise ValueError("Invalid proj_type")
        self.proj_type = proj_type
        self.vmem_budget_bytes = vmem_budget_bytes   # None => derive from the chip's VMEM
        C = self.feature_dim = feature_dim
        k1, k2, k3, k4, k5, k6 = jax.random.split(key, 6)

        # LayerNorm params (Mamba2Block.norm / norm2), stored (C, 1) (channel = sublane).
        self.ln1_w = (1.0 + 0.1 * jax.random.normal(k1, (C, 1))).astype(jnp.float32)
        self.ln1_b = (0.1 * jax.random.normal(k2, (C, 1))).astype(jnp.float32)
        self.ln2_w = (1.0 + 0.1 * jax.random.normal(k3, (C, 1))).astype(jnp.float32)
        self.ln2_b = (0.1 * jax.random.normal(k4, (C, 1))).astype(jnp.float32)

        # Linear(C, C) params, PyTorch layout (out, in); default uniform(-1/sqrt(C), 1/sqrt(C)).
        bound = 1.0 / math.sqrt(C)
        self.W = jax.random.uniform(k5, (C, C), jnp.float32, -bound, bound)
        self.bias = jax.random.uniform(k6, (C, 1), jnp.float32, -bound, bound)

        # Pack the five (C,1) vector params into one resident (C, 8) operand
        # (one BlockSpec / DMA instead of five).
        self.vecs = jnp.concatenate(
            [self.ln1_w, self.ln1_b, self.ln2_w, self.ln2_b, self.bias,
             jnp.zeros((C, 3), jnp.float32)], axis=1)

    def __call__(self, data):
        B, C, d1, d2, d3 = data.shape
        assert C == self.feature_dim
        S = d2 * d3
        x = data.reshape(B, C, d1, S)                        # contiguous reshape (free)
        itemsize = jnp.dtype(x.dtype).itemsize

        # Generation-aware VMEM budgeting.
        cap = _vmem_capacity_bytes()
        limit_target = min(cap * 3 // 4, 96 << 20)           # ~96 MiB v5e/v6e, ~48 MiB v7x
        param_bytes = 2 * 4 * (C * C + 128 * C)               # resident W + packed vecs (lane-padded)
        headroom = 4 << 20
        if self.vmem_budget_bytes is None:
            budget = max(limit_target - param_bytes - headroom, 2 << 20)
        else:
            budget = int(self.vmem_budget_bytes)

        tile_d1, tile_s = _choose_tiles(C, d1, S, itemsize, budget)

        # v7x has 2 TensorCores: expose >= 2 blocks on the parallel grid axes so both cores
        # get work (costs only a little lane padding / one extra step on single-core chips).
        if B * pl.cdiv(d1, tile_d1) < 2 and d1 > 128:
            tile_d1 = 128 * ((pl.cdiv(d1, 128) + 1) // 2)

        grid = (B, pl.cdiv(d1, tile_d1), pl.cdiv(S, tile_s))

        used = _block_footprint_bytes(C, tile_d1, tile_s, itemsize) + param_bytes
        vmem_limit = int(min(cap, max(limit_target, used + headroom)))

        x_spec = pl.BlockSpec((None, C, tile_d1, tile_s), lambda b, i, k: (b, 0, i, k))
        out_spec = pl.BlockSpec((None, C, tile_d1), lambda b, i, k: (b, 0, i))

        def resident(shape):                                  # params: DMA once, stay resident
            return pl.BlockSpec(shape, lambda b, i, k: (0, 0))

        compiler_params = pltpu.CompilerParams(
            dimension_semantics=("parallel", "parallel", "arbitrary"),
            vmem_limit_bytes=vmem_limit,
        )
        scratch = [pltpu.VMEM((C, tile_d1), jnp.float32)]
        out_shape = jax.ShapeDtypeStruct((B, C, d1), jnp.float32)
        cost = pl.CostEstimate(
            flops=2 * B * C * C * d1,
            transcendentals=0,
            bytes_accessed=B * C * d1 * S * itemsize + B * C * d1 * 4 + 4 * (C * C + 8 * C),
        )

        if self.proj_type == "mamba":
            kernel = functools.partial(_fused_mamba_kernel, S=S, tile_s=tile_s)
            return pl.pallas_call(
                kernel,
                out_shape=out_shape,
                grid=grid,
                in_specs=[x_spec, resident((C, 8)), resident((C, C))],
                out_specs=out_spec,
                scratch_shapes=scratch,
                compiler_params=compiler_params,
                cost_estimate=cost,
            )(x, self.vecs, self.W)
        else:  # "linear"
            kernel = functools.partial(_fused_linear_kernel, S=S, tile_s=tile_s)
            return pl.pallas_call(
                kernel,
                out_shape=out_shape,
                grid=grid,
                in_specs=[x_spec, resident((C, C)), resident((C, 1))],
                out_specs=out_spec,
                scratch_shapes=scratch,
                compiler_params=compiler_params,
                cost_estimate=cost,
            )(x, self.W, self.bias)


# ------------------------------ pure-JAX reference -------------------------- #

def _reference_forward(module, data):
    B, C, d1, d2, d3 = data.shape
    pooled = jnp.max(data.reshape(B, C, d1, d2 * d3), axis=-1)        # (B, C, d1)
    tok = jnp.transpose(pooled, (0, 2, 1)).astype(jnp.float32)        # (B, d1, C)

    def ln(x, g, b):
        mu = jnp.mean(x, axis=-1, keepdims=True)
        var = jnp.mean(jnp.square(x - mu), axis=-1, keepdims=True)
        return (x - mu) * jax.lax.rsqrt(var + LN_EPS) * g + b

    if module.proj_type == "mamba":
        h = ln(tok, module.ln1_w[:, 0], module.ln1_b[:, 0])
        mixed = h                                                     # mixer stub = identity
        resid = mixed + tok
        h2 = ln(resid, module.ln2_w[:, 0], module.ln2_b[:, 0])
        out = h2 @ module.W.T + module.bias[:, 0]
    else:
        out = tok @ module.W.T + module.bias[:, 0]
    return jnp.transpose(out, (0, 2, 1))                              # (B, C, d1)


if __name__ == "__main__":
    # Config 1: toy shapes, "mamba" projection (single d1 tile, single spatial chunk).
    B, C, d1, d2, d3 = 2, 32, 16, 8, 8
    data = jax.random.normal(jax.random.PRNGKey(0), (B, C, d1, d2, d3), dtype=jnp.float32)

    mod = AixsPositionPallas(feature_dim=C, proj_type="mamba")
    out = jax.block_until_ready(mod(data))
    ref = _reference_forward(mod, data)
    assert out.shape == (B, C, d1), out.shape
    assert bool(jnp.all(jnp.isfinite(out)))
    assert bool(jnp.allclose(out, ref, rtol=1e-2, atol=3e-2)), \
        float(jnp.max(jnp.abs(out - ref)))

    # Config 2: "linear" projection on the same data.
    mod_lin = AixsPositionPallas(feature_dim=C, proj_type="linear")
    out_lin = jax.block_until_ready(mod_lin(data))
    ref_lin = _reference_forward(mod_lin, data)
    assert out_lin.shape == (B, C, d1)
    assert bool(jnp.allclose(out_lin, ref_lin, rtol=1e-2, atol=3e-2))

    # Config 3: larger d1 and a non-multiple-of-128 spatial extent with a deliberately tiny
    # budget, exercising d1 tiling, the multi-chunk running max AND the in-kernel lane mask.
    B2, C2, e1, e2, e3 = 1, 8, 256, 18, 18
    data2 = jax.random.normal(jax.random.PRNGKey(1), (B2, C2, e1, e2, e3), dtype=jnp.float32)
    mod2 = AixsPositionPallas(feature_dim=C2, proj_type="mamba",
                              vmem_budget_bytes=1536 * 1024)
    out2 = jax.block_until_ready(mod2(data2))
    ref2 = _reference_forward(mod2, data2)
    assert out2.shape == (B2, C2, e1)
    assert bool(jnp.all(jnp.isfinite(out2)))
    assert bool(jnp.allclose(out2, ref2, rtol=1e-2, atol=3e-2))

    # Config 4: B==1 with d1 fitting a single tile -> exercises the ">=2 parallel blocks"
    # split (dual-TensorCore friendliness on v7x).
    B3, C3, f1, f2, f3 = 1, 16, 256, 8, 8
    data3 = jax.random.normal(jax.random.PRNGKey(2), (B3, C3, f1, f2, f3), dtype=jnp.float32)
    mod3 = AixsPositionPallas(feature_dim=C3, proj_type="mamba")
    out3 = jax.block_until_ready(mod3(data3))
    ref3 = _reference_forward(mod3, data3)
    assert out3.shape == (B3, C3, f1)
    assert bool(jnp.allclose(out3, ref3, rtol=1e-2, atol=3e-2))

    print("KERNEL_OK")
</pallas_src>

<mosaic_0001>
module attributes {stable_mosaic.version = 11 : i64} {
  func.func @_fused_mamba_kernel(%arg0: i32, %arg1: i32, %arg2: i32, %arg3: memref<1x32x16x64xf32, #tpu.memory_space<vmem>>, %arg4: memref<32x8xf32, #tpu.memory_space<vmem>>, %arg5: memref<32x32xf32, #tpu.memory_space<vmem>>, %arg6: memref<1x32x16xf32, #tpu.memory_space<vmem>>, %arg7: memref<32x16xf32, #tpu.memory_space<vmem>>) attributes {dimension_semantics = [#tpu.dimension_semantics<parallel>, #tpu.dimension_semantics<parallel>, #tpu.dimension_semantics<arbitrary>], iteration_bounds = array<i64: 2, 1, 1>, scalar_prefetch = 0 : i64, scratch_operands = 1 : i64, tpu.core_type = #tpu.core_type<tc>, window_params = [{transform_indices = @transform_0, window_bounds = array<i64: 1, 32, 16, 64>}, {pipeline_mode = #tpu.pipeline_mode<synchronous>, transform_indices = @transform_1, window_bounds = array<i64: 32, 8>}, {pipeline_mode = #tpu.pipeline_mode<synchronous>, transform_indices = @transform_2, window_bounds = array<i64: 32, 32>}, {transform_indices = @transform_3, window_bounds = array<i64: 1, 32, 16>}]} {
    %c0_i32 = arith.constant 0 : i32
    %0 = arith.cmpi eq, %arg2, %c0_i32 : i32
    %1 = arith.extui %0 : i1 to i32
    %c0_i32_0 = arith.constant 0 : i32
    %2 = arith.cmpi ne, %1, %c0_i32_0 : i32
    scf.if %2 {
      %cst_10 = arith.constant 0xFF800000 : f32
      %12 = vector.broadcast %cst_10 : f32 to vector<32x16xf32>
      %c0_11 = arith.constant 0 : index
      %c0_12 = arith.constant 0 : index
      %13 = vector.load %arg7[%c0_11, %c0_12] : memref<32x16xf32, #tpu.memory_space<vmem>>, vector<32x16xf32>
      tpu.vector_store %arg7[%c0_11, %c0_12], %12 {strides = array<i32>} : memref<32x16xf32, #tpu.memory_space<vmem>>, vector<32x16xf32>,
    } else {
    }
    %c0 = arith.constant 0 : index
    %c0_1 = arith.constant 0 : index
    %3 = vector.load %arg7[%c0, %c0_1] : memref<32x16xf32, #tpu.memory_space<vmem>>, vector<32x16xf32>
    %c0_2 = arith.constant 0 : index
    %c0_3 = arith.constant 0 : index
    %c0_4 = arith.constant 0 : index
    %c0_5 = arith.constant 0 : index
    %4 = vector.load %arg3[%c0_2, %c0_3, %c0_4, %c0_5] : memref<1x32x16x64xf32, #tpu.memory_space<vmem>>, vector<1x32x16x64xf32>
    %5 = vector.shape_cast %4 : vector<1x32x16x64xf32> to vector<32x16x64xf32>
    %cst = arith.constant dense<0xFF800000> : vector<32x16xf32>
    %6 = vector.multi_reduction <maximumf>, %5, %cst [2] : vector<32x16x64xf32> to vector<32x16xf32>
    %7 = arith.maximumf %3, %6 : vector<32x16xf32>
    %c0_6 = arith.constant 0 : index
    %c0_7 = arith.constant 0 : index
    %8 = vector.load %arg7[%c0_6, %c0_7] : memref<32x16xf32, #tpu.memory_space<vmem>>, vector<32x16xf32>
    tpu.vector_store %arg7[%c0_6, %c0_7], %7 {strides = array<i32>} : memref<32x16xf32, #tpu.memory_space<vmem>>, vector<32x16xf32>,
    %c0_i32_8 = arith.constant 0 : i32
    %9 = arith.cmpi eq, %arg2, %c0_i32_8 : i32
    %10 = arith.extui %9 : i1 to i32
    %c0_i32_9 = arith.constant 0 : i32
    %11 = arith.cmpi ne, %10, %c0_i32_9 : i32
    scf.if %11 {
      %c0_10 = arith.constant 0 : index
      %c0_11 = arith.constant 0 : index
      %12 = vector.load %arg7[%c0_10, %c0_11] : memref<32x16xf32, #tpu.memory_space<vmem>>, vector<32x16xf32>
      %c0_12 = arith.constant 0 : index
      %c0_13 = arith.constant 0 : index
      %13 = vector.load %arg4[%c0_12, %c0_13] : memref<32x8xf32, #tpu.memory_space<vmem>>, vector<32x8xf32>
      %14 = vector.extract_strided_slice %13 {offsets = [0, 0], sizes = [32, 1], strides = [1, 1]} : vector<32x8xf32> to vector<32x1xf32>
      %15 = vector.extract_strided_slice %13 {offsets = [0, 1], sizes = [32, 1], strides = [1, 1]} : vector<32x8xf32> to vector<32x1xf32>
      %16 = vector.extract_strided_slice %13 {offsets = [0, 2], sizes = [32, 1], strides = [1, 1]} : vector<32x8xf32> to vector<32x1xf32>
      %17 = vector.extract_strided_slice %13 {offsets = [0, 3], sizes = [32, 1], strides = [1, 1]} : vector<32x8xf32> to vector<32x1xf32>
      %18 = vector.extract_strided_slice %13 {offsets = [0, 4], sizes = [32, 1], strides = [1, 1]} : vector<32x8xf32> to vector<32x1xf32>
      %cst_14 = arith.constant dense<0.000000e+00> : vector<16xf32>
      %19 = vector.multi_reduction <add>, %12, %cst_14 [0] : vector<32x16xf32> to vector<16xf32>
      %20 = vector.shape_cast %19 : vector<16xf32> to vector<1x16xf32>
      %cst_15 = arith.constant 3.200000e+01 : f32
      %21 = vector.broadcast %cst_15 : f32 to vector<1x16xf32>
      %22 = arith.divf %20, %21 : vector<1x16xf32>
      %23 = vector.broadcast %22 : vector<1x16xf32> to vector<32x16xf32>
      %24 = arith.subf %12, %23 : vector<32x16xf32>
      %25 = arith.mulf %24, %24 : vector<32x16xf32>
      %cst_16 = arith.constant dense<0.000000e+00> : vector<16xf32>
      %26 = vector.multi_reduction <add>, %25, %cst_16 [0] : vector<32x16xf32> to vector<16xf32>
      %27 = vector.shape_cast %26 : vector<16xf32> to vector<1x16xf32>
      %cst_17 = arith.constant 3.200000e+01 : f32
      %28 = vector.broadcast %cst_17 : f32 to vector<1x16xf32>
      %29 = arith.divf %27, %28 : vector<1x16xf32>
      %30 = vector.broadcast %22 : vector<1x16xf32> to vector<32x16xf32>
      %31 = arith.subf %12, %30 : vector<32x16xf32>
      %cst_18 = arith.constant 9.99999974E-6 : f32
      %32 = vector.broadcast %cst_18 : f32 to vector<1x16xf32>
      %33 = arith.addf %29, %32 : vector<1x16xf32>
      %34 = math.rsqrt %33 : vector<1x16xf32>
      %35 = vector.broadcast %34 : vector<1x16xf32> to vector<32x16xf32>
      %36 = arith.mulf %31, %35 : vector<32x16xf32>
      %37 = vector.broadcast %14 : vector<32x1xf32> to vector<32x16xf32>
      %38 = arith.mulf %36, %37 : vector<32x16xf32>
      %39 = vector.broadcast %15 : vector<32x1xf32> to vector<32x16xf32>
      %40 = arith.addf %38, %39 : vector<32x16xf32>
      %41 = arith.addf %40, %12 : vector<32x16xf32>
      %cst_19 = arith.constant dense<0.000000e+00> : vector<16xf32>
      %42 = vector.multi_reduction <add>, %41, %cst_19 [0] : vector<32x16xf32> to vector<16xf32>
      %43 = vector.shape_cast %42 : vector<16xf32> to vector<1x16xf32>
      %cst_20 = arith.constant 3.200000e+01 : f32
      %44 = vector.broadcast %cst_20 : f32 to vector<1x16xf32>
      %45 = arith.divf %43, %44 : vector<1x16xf32>
      %46 = vector.broadcast %45 : vector<1x16xf32> to vector<32x16xf32>
      %47 = arith.subf %41, %46 : vector<32x16xf32>
      %48 = arith.mulf %47, %47 : vector<32x16xf32>
      %cst_21 = arith.constant dense<0.000000e+00> : vector<16xf32>
      %49 = vector.multi_reduction <add>, %48, %cst_21 [0] : vector<32x16xf32> to vector<16xf32>
      %50 = vector.shape_cast %49 : vector<16xf32> to vector<1x16xf32>
      %cst_22 = arith.constant 3.200000e+01 : f32
      %51 = vector.broadcast %cst_22 : f32 to vector<1x16xf32>
      %52 = arith.divf %50, %51 : vector<1x16xf32>
      %53 = vector.broadcast %45 : vector<1x16xf32> to vector<32x16xf32>
      %54 = arith.subf %41, %53 : vector<32x16xf32>
      %cst_23 = arith.constant 9.99999974E-6 : f32
      %55 = vector.broadcast %cst_23 : f32 to vector<1x16xf32>
      %56 = arith.addf %52, %55 : vector<1x16xf32>
      %57 = math.rsqrt %56 : vector<1x16xf32>
      %58 = vector.broadcast %57 : vector<1x16xf32> to vector<32x16xf32>
      %59 = arith.mulf %54, %58 : vector<32x16xf32>
      %60 = vector.broadcast %16 : vector<32x1xf32> to vector<32x16xf32>
      %61 = arith.mulf %59, %60 : vector<32x16xf32>
      %62 = vector.broadcast %17 : vector<32x1xf32> to vector<32x16xf32>
      %63 = arith.addf %61, %62 : vector<32x16xf32>
      %c0_24 = arith.constant 0 : index
      %c0_25 = arith.constant 0 : index
      %64 = vector.load %arg5[%c0_24, %c0_25] : memref<32x32xf32, #tpu.memory_space<vmem>>, vector<32x32xf32>
      %cst_26 = arith.constant dense<0.000000e+00> : vector<32x16xf32>
      %65 = tpu.matmul %64, %63, %cst_26 {dimension_numbers = #tpu.dot_dimension_numbers<[1], [0], [0], [1], [0, 0, 1, 1], [], []>} : vector<32x32xf32>, vector<32x16xf32>, vector<32x16xf32> -> vector<32x16xf32>
      %66 = vector.broadcast %18 : vector<32x1xf32> to vector<32x16xf32>
      %67 = arith.addf %65, %66 : vector<32x16xf32>
      %c0_27 = arith.constant 0 : index
      %c0_28 = arith.constant 0 : index
      %c0_29 = arith.constant 0 : index
      %68 = vector.load %arg6[%c0_27, %c0_28, %c0_29] : memref<1x32x16xf32, #tpu.memory_space<vmem>>, vector<1x32x16xf32>
      %69 = vector.shape_cast %68 : vector<1x32x16xf32> to vector<32x16xf32>
      %70 = vector.shape_cast %67 : vector<32x16xf32> to vector<1x32x16xf32>
      tpu.vector_store %arg6[%c0_27, %c0_28, %c0_29], %70 {strides = array<i32>} : memref<1x32x16xf32, #tpu.memory_space<vmem>>, vector<1x32x16xf32>,
    } else {
    }
    return
  }
  func.func @transform_0(%arg0: i32, %arg1: i32, %arg2: i32) -> (i32, i32, i32, i32) {
    %c0_i32 = arith.constant 0 : i32
    %c0_i32_0 = arith.constant 0 : i32
    return %arg0, %c0_i32, %arg1, %arg2 : i32, i32, i32, i32
  }
  func.func @transform_1(%arg0: i32, %arg1: i32, %arg2: i32) -> (i32, i32) {
    %c0_i32 = arith.constant 0 : i32
    %c0_i32_0 = arith.constant 0 : i32
    %c0_i32_1 = arith.constant 0 : i32
    return %c0_i32, %c0_i32_0 : i32, i32
  }
  func.func @transform_2(%arg0: i32, %arg1: i32, %arg2: i32) -> (i32, i32) {
    %c0_i32 = arith.constant 0 : i32
    %c0_i32_0 = arith.constant 0 : i32
    %c0_i32_1 = arith.constant 0 : i32
    return %c0_i32, %c0_i32_0 : i32, i32
  }
  func.func @transform_3(%arg0: i32, %arg1: i32, %arg2: i32) -> (i32, i32, i32) {
    %c0_i32 = arith.constant 0 : i32
    %c0_i32_0 = arith.constant 0 : i32
    return %arg0, %c0_i32, %arg1 : i32, i32, i32
  }
}

</mosaic_0001>

<bundles_post_ra>
// kernel: tpu_custom_call.1
= control target key start
LH: loop header
LB: loop body
LE: loop exit
PB: predicated region body
PF: predicated region fallthrough
CT: control target
= control target key end

     0   :  { %8 = vsyncpa [#allocation4], 0  ;;  %s2086_s0 = inlined_call_operand.hbm [shape: f32[2,32,16,64], index: 0, kind: input, shape index: {}]   ;;  %s2087_s1 = inlined_call_operand.vmem [shape: f32[32,8], index: 1, kind: input, shape index: {}]   ;;  %s2088_s2 = inlined_call_operand.vmem [shape: f32[32,32], index: 2, kind: input, shape index: {}]   ;;  %s2089_s3 = inlined_call_operand.vmem [shape: f32[2,32,16], index: 3, kind: output, shape index: {}]  }
   0x1   :  { %10 = vsyncpa [#allocation4 + $0x1], 0  ;;  %s1546_s12 = smov 0   ;;  %s1548_s13 = smov 0  }
   0x2   :  { %s1550_s14 = smov 0   ;;  %s1552_s15 = smov 0  }
   0x3   :  { %s1554_s16 = smov 0   ;;  %s1556_s17 = smov 0  }
   0x4 LB: > { %s1302_s18 = sadd.s32 4294967295, %s1515_s17   ;;  %s35_s19 = sadd.s32 1, %s1511_s16  ;;  %s1515_s17 = sphi %s1556_s17, %s16_s17   ;;  %s1511_s16 = sphi %s1554_s16, %s2097_s16   ;;  %s1507_s15 = sphi %s1552_s15, %s2096_s15   ;;  %s1503_s14 = sphi %s1550_s14, %s2095_s14   ;;  %s1499_s13 = sphi %s1548_s13, %s2094_s13   ;;  %s1495_s12 = sphi %s1546_s12, %s2093_s12  }
   0x5   : > { %p37_p0 = scmp.ge.s32.totalorder %s35_s19, 2  ;;  %s46_s20 = sadd.s32 1, %s1503_s14 }
   0x6   : > { %p53_p1 = scmp.ne.s32.totalorder %s1503_s14, %s1499_s13  ;;  %p54_p2 = scmp.eq.s32.totalorder %s1515_s17, 0 }
   0x7   : > { %s2099_s19 = smov (%p37_p0, %s35_s19), 0  ;;  %p59_p4 = scmp.ne.s32.totalorder %s1499_s13, %s1495_s12 }
   0x8   : > { %p1582_p3 = por %p54_p2, %p53_p1  ;;  %s39_s22 = ssub.s32 %s1511_s16, %s2099_s19 }
   0x9   : > { %p60_p5 = scmp.eq.s32.totalorder %s1302_s18, 0  ;;  %p44_p6 = scmp.eq.s32.totalorder %s39_s22, 0 }
   0xa   : > { %p1361_p8 = scmp.lt.s32.totalorder %s1515_s17, 2  ;;  %s159_s25 = sand.u32 1, %s1503_s14  }
   0xb   : > { %p1589_p7 = por %p60_p5, %p59_p4  ;;  %s1319_s26 = sshll.u32 %s1511_s16, 13 }
   0xc   : > { %s1595_s24 = scalar_select %p44_p6, %s1503_s14, %s46_s20  }
   0xd   : > { %s1306_s27 = sshll.u32 %s159_s25, 9  ;;  %s1602_s30 = scalar_lea.hbm %s2086_s0, %s1319_s26 }
   0xe   : > { %s163_s4 = scalar_lea.vmem [#allocation3], %s1306_s27  ;;  %p1606_p9 = pnand %p1361_p8, %p1582_p3 }
   0xf   : > { %s173_s5 = sshll.u32 %s163_s4, 4  ;;  %s1612_s7 = scalar_lea.sflag [#allocation4], %s159_s25  ;;  %s1610_s5 = int_to_ptr.vmem [resolvable:$true] %s173_s5 }
  0x10   : > { %s1435_s8 = scalar_lea.hbm %s1602_s30, 8192  ;;  %p1437_p11 = pneg %p1606_p9 }
  0x11   : > { %p1436_p10 = scmp.ne.s32.totalorder %s1602_s30, %s1435_s8  ;;  %s1440_s11 = scalar_lea.hbm %s2086_s0, 16384 }
  0x12   : > { %p1441_p0 = scmp.lt.u32.totalorder %s1602_s30, %s2086_s0  ;;  %p1442_p1 = scmp.lt.u32.totalorder %s1440_s11, %s1435_s8 }
  0x13   : > { %p1438_p12 = pnand %p1437_p11, %p1436_p10  ;;  %p1444_p3 = scmp.lt.u32.totalorder %s1435_s8, %s1602_s30 }
  0x14   : > { %p1443_p2 = por %p1442_p1, %p1441_p0 }
  0x15   : > { %p1439_p13 = pneg %p1438_p12 }
  0x16   : > { %p1445_p4 = por %p1444_p3, %p1443_p2 }
  0x18   : > { %p1446_p5 = pnand %p1445_p4, %p1439_p13 }
  0x1a   : > { %1449 = shalt.err (!%p1446_p5)
}
  0x1b   : > { %s1450_s20 = scalar_lea.vmem %s1610_s5, 8192  ;;  %s1517_s21 = smov [#allocation3]  }
  0x1c   : > { %p1451_p6 = scmp.ne.s32.totalorder %s1610_s5, %s1450_s20  ;;  %s1455_s22 = sshll.u32 %s1517_s21, 4  ;;  %s1456_s22 = int_to_ptr.vmem [resolvable:$false] %s1455_s22 }
  0x1d   : > { %s1457_s25 = scalar_lea.vmem %s1456_s22, 16384  ;;  %p1458_p12 = scmp.lt.s32.totalorder %s1610_s5, %s1456_s22 }
  0x1e   : > { %p1453_p8 = pnand %p1451_p6, %p1437_p11  ;;  %p1459_p0 = scmp.lt.s32.totalorder %s1457_s25, %s1450_s20 }
  0x20   : > { %p1454_p10 = pneg %p1453_p8  ;;  %p1460_p1 = por %p1459_p0, %p1458_p12 }
  0x22   : > { %p1461_p2 = pnand %p1460_p1, %p1454_p10 }
  0x24   : > { %1464 = shalt.err (!%p1461_p2)
}
  0x25   : > { %s1518_s26 = smov 128   ;;  %s1519_s27 = smov 8  }
  0x26   : > { %1360 = dma.hbm_to_vmem [thread:$0]  (!%p1606_p9), %s1602_s30, 8192, %s1610_s5, %s1612_s7, %s1518_s26, %s1518_s26, %s1519_s27  }
  0x27   : > { %p1309_p11 = scmp.ge.s32.totalorder %s1515_s17, 1  ;;  %p181_p13 = scmp.lt.s32.totalorder %s1515_s17, 3 }
  0x29   : > { %p182_p3 = pnand %p1309_p11, %p181_p13 }
  0x2a   : > { %s187_s28 = sand.u32 (!%p182_p3), 1, %s1499_s13  }
  0x2b   : > { %185 = sbr.rel (%p182_p3) target bundleno = 687 (0x2af), region = 32  ;;  %s1310_s29 = sshll.u32 (!%p182_p3), %s187_s28, 9 }
  0x2c   : > { %s188_s4 = scalar_lea.sflag (!%p182_p3), [#allocation4], %s187_s28  ;;  %s1643_s8 = scalar_lea.vmem (!%p182_p3), [#allocation3], %s1310_s29 }
  0x32   : > { %1490 = dma.done.wait (%p1589_p7), %s188_s4, 8192  }
  0x33   : > { %1492 = vsyncadd (%p1589_p7), %s188_s4, 4294959104  ;;  %vm303_vm0 = vcmask 523264   ;;  %v241_v0 = vld [vmem:[%s1643_s8 + $0x10] sm:$0xff]  ;;  %v239_v1 = vld [vmem:[%s1643_s8] sm:$0xff]  ;;  %v1520_v62 = vmov 0   ;;  %vm230_vm1 = vcmask 130048  }
  0x34   : > { %v242_v2 = vld [vmem:[%s1643_s8 + $0x18] sm:$0xff]  ;;  %v310_v3 = vsel %vm303_vm0, %v241_v0, -inf  ;;  %v304_v4 = vsel %vm303_vm0, %v239_v1, -inf  ;;  %v240_v5 = vld [vmem:[%s1643_s8 + $0x8] sm:$0xff]  ;;  %v255_v9 = vld [vmem:[%s1643_s8 + $0x80] sm:$0xff]  ;;  %1419 = vset.pattern.permute.xlu1 %v1520_v62  ;;  %1418 = vset.pattern.permute.xlu0 %v1520_v62  ;;  %vm571_vm2 = vcmask 130112  }
  0x35   : > { %311 = vmax.xlane.f32.xlu1 %v310_v3  ;;  %305 = vmax.xlane.f32.xlu0 %v304_v4  ;;  %v313_v6 = vsel %vm303_vm0, %v242_v2, -inf  ;;  %v307_v7 = vsel %vm303_vm0, %v240_v5, -inf  ;;  %v256_v8 = vld [vmem:[%s1643_s8 + $0x88] sm:$0xff]  ;;  %v352_v11 = vsel %vm303_vm0, %v255_v9, -inf  ;;  %v258_v12 = vld [vmem:[%s1643_s8 + $0x98] sm:$0xff]  ;;  %v257_v13 = vld [vmem:[%s1643_s8 + $0x90] sm:$0xff] }
  0x36   : > { %v355_v10 = vsel %vm303_vm0, %v256_v8, -inf  ;;  %v361_v14 = vsel %vm303_vm0, %v258_v12, -inf  ;;  %v358_v15 = vsel %vm303_vm0, %v257_v13, -inf  ;;  %v244_v16 = vld [vmem:[%s1643_s8 + $0x28] sm:$0xff]  ;;  %v243_v17 = vld [vmem:[%s1643_s8 + $0x20] sm:$0xff]  ;;  %v246_v24 = vld [vmem:[%s1643_s8 + $0x38] sm:$0xff] }
  0x37   : > { %v319_v18 = vsel %vm303_vm0, %v244_v16, -inf  ;;  %v316_v19 = vsel %vm303_vm0, %v243_v17, -inf  ;;  %v260_v20 = vld [vmem:[%s1643_s8 + $0xa8] sm:$0xff]  ;;  %v259_v21 = vld [vmem:[%s1643_s8 + $0xa0] sm:$0xff]  ;;  %v245_v25 = vld [vmem:[%s1643_s8 + $0x30] sm:$0xff]  ;;  %v325_v26 = vsel %vm303_vm0, %v246_v24, -inf }
  0x38   : > { %v367_v22 = vsel %vm303_vm0, %v260_v20, -inf  ;;  %v364_v23 = vsel %vm303_vm0, %v259_v21, -inf  ;;  %v322_v27 = vsel %vm303_vm0, %v245_v25, -inf  ;;  %v262_v28 = vld [vmem:[%s1643_s8 + $0xb8] sm:$0xff]  ;;  %v261_v29 = vld [vmem:[%s1643_s8 + $0xb0] sm:$0xff]  ;;  %v272_v32 = vld [vmem:[%s1643_s8 + $0x108] sm:$0xff] }
  0x39   : > { %314 = vmax.xlane.f32.xlu1 %v313_v6  ;;  %308 = vmax.xlane.f32.xlu0 %v307_v7  ;;  %v373_v30 = vsel %vm303_vm0, %v262_v28, -inf  ;;  %v370_v31 = vsel %vm303_vm0, %v261_v29, -inf  ;;  %v271_v33 = vld [vmem:[%s1643_s8 + $0x100] sm:$0xff]  ;;  %v403_v34 = vsel %vm303_vm0, %v272_v32, -inf  ;;  %v274_v36 = vld [vmem:[%s1643_s8 + $0x118] sm:$0xff]  ;;  %v273_v37 = vld [vmem:[%s1643_s8 + $0x110] sm:$0xff] }
  0x3a   : > { %v400_v35 = vsel %vm303_vm0, %v271_v33, -inf  ;;  %v409_v38 = vsel %vm303_vm0, %v274_v36, -inf  ;;  %v406_v39 = vsel %vm303_vm0, %v273_v37, -inf  ;;  %v248_v40 = vld [vmem:[%s1643_s8 + $0x48] sm:$0xff]  ;;  %v247_v41 = vld [vmem:[%s1643_s8 + $0x40] sm:$0xff]  ;;  %v250_v52 = vld [vmem:[%s1643_s8 + $0x58] sm:$0xff] }
  0x3b   : > { %v331_v42 = vsel %vm303_vm0, %v248_v40, -inf  ;;  %v328_v43 = vsel %vm303_vm0, %v247_v41, -inf  ;;  %v264_v44 = vld [vmem:[%s1643_s8 + $0xc8] sm:$0xff]  ;;  %v263_v45 = vld [vmem:[%s1643_s8 + $0xc0] sm:$0xff]  ;;  %v249_v53 = vld [vmem:[%s1643_s8 + $0x50] sm:$0xff]  ;;  %v337_v54 = vsel %vm303_vm0, %v250_v52, -inf }
  0x3c   : > { %v379_v46 = vsel %vm303_vm0, %v264_v44, -inf  ;;  %v376_v47 = vsel %vm303_vm0, %v263_v45, -inf  ;;  %v276_v48 = vld [vmem:[%s1643_s8 + $0x128] sm:$0xff]  ;;  %v275_v49 = vld [vmem:[%s1643_s8 + $0x120] sm:$0xff]  ;;  %v334_v55 = vsel %vm303_vm0, %v249_v53, -inf  ;;  %v266_v56 = vld [vmem:[%s1643_s8 + $0xd8] sm:$0xff] }
  0x3d   : > { %356 = vmax.xlane.f32.xlu1 %v355_v10  ;;  %353 = vmax.xlane.f32.xlu0 %v352_v11  ;;  %v415_v50 = vsel %vm303_vm0, %v276_v48, -inf  ;;  %v412_v51 = vsel %vm303_vm0, %v275_v49, -inf  ;;  %v265_v57 = vld [vmem:[%s1643_s8 + $0xd0] sm:$0xff]  ;;  %v385_v58 = vsel %vm303_vm0, %v266_v56, -inf  ;;  %v278_v60 = vld [vmem:[%s1643_s8 + $0x138] sm:$0xff]  ;;  %v288_v1 = vld [vmem:[%s1643_s8 + $0x188] sm:$0xff] }
  0x3e   : > { %v382_v59 = vsel %vm303_vm0, %v265_v57, -inf  ;;  %v277_v61 = vld [vmem:[%s1643_s8 + $0x130] sm:$0xff]  ;;  %v421_v63 = vsel %vm303_vm0, %v278_v60, -inf  ;;  %v287_v2 = vld [vmem:[%s1643_s8 + $0x180] sm:$0xff]  ;;  %v451_v3 = vsel %vm303_vm0, %v288_v1, -inf  ;;  %v290_v5 = vld [vmem:[%s1643_s8 + $0x198] sm:$0xff] }
  0x3f   : > { %v418_v0 = vsel %vm303_vm0, %v277_v61, -inf  ;;  %v448_v4 = vsel %vm303_vm0, %v287_v2, -inf  ;;  %v289_v6 = vld [vmem:[%s1643_s8 + $0x190] sm:$0xff]  ;;  %v457_v7 = vsel %vm303_vm0, %v290_v5, -inf  ;;  %v252_v9 = vld [vmem:[%s1643_s8 + $0x68] sm:$0xff]  ;;  %v251_v10 = vld [vmem:[%s1643_s8 + $0x60] sm:$0xff] }
  0x40   : > { %v454_v8 = vsel %vm303_vm0, %v289_v6, -inf  ;;  %v343_v11 = vsel %vm303_vm0, %v252_v9, -inf  ;;  %v340_v12 = vsel %vm303_vm0, %v251_v10, -inf  ;;  %v268_v13 = vld [vmem:[%s1643_s8 + $0xe8] sm:$0xff]  ;;  %v254_v25 = vld [vmem:[%s1643_s8 + $0x78] sm:$0xff]  ;;  %vm852_vm3 = vcmask 1041409  }
  0x41   : > { %362 = vmax.xlane.f32.xlu1 %v361_v14  ;;  %359 = vmax.xlane.f32.xlu0 %v358_v15  ;;  %v267_v14 = vld [vmem:[%s1643_s8 + $0xe0] sm:$0xff]  ;;  %v391_v15 = vsel %vm303_vm0, %v268_v13, -inf  ;;  %v280_v17 = vld [vmem:[%s1643_s8 + $0x148] sm:$0xff]  ;;  %v270_v29 = vld [vmem:[%s1643_s8 + $0xf8] sm:$0xff]  ;;  %vm854_vm4 = vcmask 1042434   ;;  %vm856_vm5 = vcmask 1043459  }
  0x42   : > { %v388_v16 = vsel %vm303_vm0, %v267_v14, -inf  ;;  %v292_v21 = vld [vmem:[%s1643_s8 + $0x1a8] sm:$0xff]  ;;  %v282_v33 = vld [vmem:[%s1643_s8 + $0x158] sm:$0xff]  ;;  %vm858_vm6 = vcmask 1044484   ;;  %vm860_vm7 = vcmask 1045509   ;;  %vm862_vm8 = vcmask 1046534  }
  0x43   : > { %v294_v37 = vld [vmem:[%s1643_s8 + $0x1b8] sm:$0xff]  ;;  %v284_v41 = vld [vmem:[%s1643_s8 + $0x168] sm:$0xff]  ;;  %vm864_vm9 = vcmask 1047559   ;;  %vm1104_vm10 = vcmask 261120   ;;  %p218_p7 = scmp.lt.s32.totalorder %s1507_s15, 1 }
  0x44   : > { %v439_v44 = vsel %vm303_vm0, %v284_v41, -inf  ;;  %v1524_v41 = vmov 3  }
  0x45   : > { %320 = vmax.xlane.f32.xlu1 %v319_v18  ;;  %317 = vmax.xlane.f32.xlu0 %v316_v19  ;;  %v279_v18 = vld [vmem:[%s1643_s8 + $0x140] sm:$0xff]  ;;  %v427_v19 = vsel %vm303_vm0, %v280_v17, -inf  ;;  %s2101_s15 = smov (!%p218_p7, %s1507_s15), 1 }
  0x46   : > { %v424_v20 = vsel %vm303_vm0, %v279_v18, -inf  ;;  %s1320_s28 = sshll.u32 %s2101_s15, 5 }
  0x49   : > { %368 = vmax.xlane.f32.xlu1 %v367_v22  ;;  %365 = vmax.xlane.f32.xlu0 %v364_v23  ;;  %v291_v22 = vld [vmem:[%s1643_s8 + $0x1a0] sm:$0xff]  ;;  %v463_v23 = vsel %vm303_vm0, %v292_v21, -inf }
  0x4a   : > { %v460_v24 = vsel %vm303_vm0, %v291_v22, -inf }
  0x4d   : > { %326 = vmax.xlane.f32.xlu1 %v325_v26  ;;  %323 = vmax.xlane.f32.xlu0 %v322_v27  ;;  %v253_v26 = vld [vmem:[%s1643_s8 + $0x70] sm:$0xff]  ;;  %v349_v27 = vsel %vm303_vm0, %v254_v25, -inf  ;;  %v1522_v25 = vmov 1  }
  0x4e   : > { %v346_v28 = vsel %vm303_vm0, %v253_v26, -inf }
  0x51   : > { %374 = vmax.xlane.f32.xlu1 %v373_v30  ;;  %371 = vmax.xlane.f32.xlu0 %v370_v31  ;;  %v269_v30 = vld [vmem:[%s1643_s8 + $0xf0] sm:$0xff]  ;;  %v397_v31 = vsel %vm303_vm0, %v270_v29, -inf }
  0x52   : > { %v394_v32 = vsel %vm303_vm0, %v269_v30, -inf }
  0x55   : > { %404 = vmax.xlane.f32.xlu1 %v403_v34  ;;  %401 = vmax.xlane.f32.xlu0 %v400_v35  ;;  %v281_v34 = vld [vmem:[%s1643_s8 + $0x150] sm:$0xff]  ;;  %v433_v35 = vsel %vm303_vm0, %v282_v33, -inf }
  0x56   : > { %v430_v36 = vsel %vm303_vm0, %v281_v34, -inf }
  0x59   : > { %410 = vmax.xlane.f32.xlu1 %v409_v38  ;;  %407 = vmax.xlane.f32.xlu0 %v406_v39  ;;  %v293_v38 = vld [vmem:[%s1643_s8 + $0x1b0] sm:$0xff]  ;;  %v469_v39 = vsel %vm303_vm0, %v294_v37, -inf }
  0x5a   : > { %v466_v40 = vsel %vm303_vm0, %v293_v38, -inf }
  0x5d   : > { %332 = vmax.xlane.f32.xlu1 %v331_v42  ;;  %329 = vmax.xlane.f32.xlu0 %v328_v43  ;;  %v283_v42 = vld [vmem:[%s1643_s8 + $0x160] sm:$0xff]  ;;  %v1521_v43 = vmov -inf  }
  0x5e   : > { %231 = vst.msk [vmem:[#allocation2] sm:$0xff] %vm230_vm1, %v1521_v43  ;;  %232 = vst.msk [vmem:[#allocation2 + $0x8] sm:$0xff] %vm230_vm1, %v1521_v43  ;;  %v436_v45 = vsel %vm303_vm0, %v283_v42, -inf }
  0x5f   : > { %233 = vst.msk [vmem:[#allocation2 + $0x10] sm:$0xff] %vm230_vm1, %v1521_v43  ;;  %234 = vst.msk [vmem:[#allocation2 + $0x18] sm:$0xff] %vm230_vm1, %v1521_v43 }
  0x61   : > { %380 = vmax.xlane.f32.xlu1 %v379_v46  ;;  %377 = vmax.xlane.f32.xlu0 %v376_v47  ;;  %v296_v46 = vld [vmem:[%s1643_s8 + $0x1c8] sm:$0xff]  ;;  %v295_v47 = vld [vmem:[%s1643_s8 + $0x1c0] sm:$0xff] }
  0x62   : > { %v475_v48 = vsel %vm303_vm0, %v296_v46, -inf  ;;  %v472_v49 = vsel %vm303_vm0, %v295_v47, -inf }
  0x65   : > { %416 = vmax.xlane.f32.xlu1 %v415_v50  ;;  %413 = vmax.xlane.f32.xlu0 %v412_v51  ;;  %v286_v50 = vld [vmem:[%s1643_s8 + $0x178] sm:$0xff]  ;;  %v285_v51 = vld [vmem:[%s1643_s8 + $0x170] sm:$0xff] }
  0x66   : > { %v445_v52 = vsel %vm303_vm0, %v286_v50, -inf  ;;  %v442_v53 = vsel %vm303_vm0, %v285_v51, -inf }
  0x69   : > { %338 = vmax.xlane.f32.xlu1 %v337_v54  ;;  %335 = vmax.xlane.f32.xlu0 %v334_v55  ;;  %v298_v54 = vld [vmem:[%s1643_s8 + $0x1d8] sm:$0xff]  ;;  %v297_v55 = vld [vmem:[%s1643_s8 + $0x1d0] sm:$0xff] }
  0x6a   : > { %v481_v56 = vsel %vm303_vm0, %v298_v54, -inf  ;;  %v478_v57 = vsel %vm303_vm0, %v297_v55, -inf }
  0x6d   : > { %386 = vmax.xlane.f32.xlu1 %v385_v58  ;;  %383 = vmax.xlane.f32.xlu0 %v382_v59  ;;  %v300_v58 = vld [vmem:[%s1643_s8 + $0x1e8] sm:$0xff]  ;;  %v299_v59 = vld [vmem:[%s1643_s8 + $0x1e0] sm:$0xff] }
  0x6e   : > { %v487_v60 = vsel %vm303_vm0, %v300_v58, -inf  ;;  %v484_v61 = vsel %vm303_vm0, %v299_v59, -inf }
  0x71   : > { %422 = vmax.xlane.f32.xlu1 %v421_v63  ;;  %419 = vmax.xlane.f32.xlu0 %v418_v0  ;;  %v302_v63 = vld [vmem:[%s1643_s8 + $0x1f8] sm:$0xff]  ;;  %v301_v0 = vld [vmem:[%s1643_s8 + $0x1f0] sm:$0xff]  ;;  %s225_s8 = scalar_lea.vmem %s2089_s3, %s1320_s28 }
  0x72   : > { %v493_v1 = vsel %vm303_vm0, %v302_v63, -inf  ;;  %v490_v2 = vsel %vm303_vm0, %v301_v0, -inf }
  0x75   : > { %452 = vmax.xlane.f32.xlu1 %v451_v3  ;;  %449 = vmax.xlane.f32.xlu0 %v448_v4  ;;  %v560_v3 = vlaneseq }
  0x77   : > { %v561_v4 = vand.u32 127, %v560_v3  ;;  %v563_v5 = vshrl.u32 %v560_v3, 7 }
  0x79   : > { %458 = vmax.xlane.f32.xlu1 %v457_v7  ;;  %455 = vmax.xlane.f32.xlu0 %v454_v8  ;;  %v566_v6 = vadd.s32 4294967288, %v561_v4  ;;  %v1786_v7 = vld [vmem:[%s2087_s1 + $0x8] sm:$0xff]  ;;  %v1789_v10 = vsub.s32 %v561_v4, %v563_v5 }
  0x7d   : > { %344 = vmax.xlane.f32.xlu1 %v343_v11  ;;  %341 = vmax.xlane.f32.xlu0 %v340_v12  ;;  %v1791_v11 = vsub.s32 %v566_v6, %v563_v5  ;;  %v1796_v12 = vld [vmem:[%s2087_s1 + $0x10] sm:$0xff] }
  0x81   : > { %392 = vmax.xlane.f32.xlu1 %v391_v15  ;;  %389 = vmax.xlane.f32.xlu0 %v388_v16  ;;  %v1802_v15 = vld [vmem:[%s2087_s1] sm:$0xff] }
  0x85   : > { %428 = vmax.xlane.f32.xlu1 %v427_v19  ;;  %425 = vmax.xlane.f32.xlu0 %v424_v20 }
  0x89   : > { %464 = vmax.xlane.f32.xlu1 %v463_v23  ;;  %461 = vmax.xlane.f32.xlu0 %v460_v24 }
  0x8d   : > { %350 = vmax.xlane.f32.xlu1 %v349_v27  ;;  %347 = vmax.xlane.f32.xlu0 %v346_v28  ;;  %v1523_v28 = vmov 2  }
  0x91   : > { %398 = vmax.xlane.f32.xlu1 %v397_v31  ;;  %395 = vmax.xlane.f32.xlu0 %v394_v32 }
  0x95   : > { %434 = vmax.xlane.f32.xlu1 %v433_v35  ;;  %431 = vmax.xlane.f32.xlu0 %v430_v36  ;;  %v1825_v35 = vld [vmem:[%s2087_s1 + $0x18] sm:$0xff] }
  0x99   : > { %470 = vmax.xlane.f32.xlu1 %v469_v39  ;;  %467 = vmax.xlane.f32.xlu0 %v466_v40 }
  0x9d   : > { %440 = vmax.xlane.f32.xlu1 %v439_v44  ;;  %437 = vmax.xlane.f32.xlu0 %v436_v45 }
  0xa1   : > { %476 = vmax.xlane.f32.xlu1 %v475_v48  ;;  %473 = vmax.xlane.f32.xlu0 %v472_v49 }
  0xa5   : > { %446 = vmax.xlane.f32.xlu1 %v445_v52  ;;  %443 = vmax.xlane.f32.xlu0 %v442_v53 }
  0xa9   : > { %482 = vmax.xlane.f32.xlu1 %v481_v56  ;;  %479 = vmax.xlane.f32.xlu0 %v478_v57 }
  0xad   : > { %488 = vmax.xlane.f32.xlu1 %v487_v60  ;;  %485 = vmax.xlane.f32.xlu0 %v484_v61 }
  0xb1   : > { %494 = vmax.xlane.f32.xlu1 %v493_v1  ;;  %491 = vmax.xlane.f32.xlu0 %v490_v2 }
  0xc2   : > { %v312_v8 = vpop.xlane.xlu1 %311  ;;  %v306_v9 = vpop.xlane.xlu0 %305  ;;  %961 = vperm.xlu1 %1419, %v1786_v7  }
  0xc3   : > { %v576_v16 = vrot.slane %v312_v8, %v1789_v10  ;;  %v565_v17 = vrot.slane %v306_v9, %v1789_v10 }
  0xc6   : > { %v315_v13 = vpop.xlane.xlu1 %314  ;;  %v309_v14 = vpop.xlane.xlu0 %308  ;;  %966 = vperm.xlu1 %1419, %v1796_v12  }
  0xc7   : > { %v580_v18 = vrot.slane %v315_v13, %v1791_v11  ;;  %v570_v19 = vrot.slane %v309_v14, %v1791_v11  ;;  %956 = vperm.xlu0 %1418, %v1802_v15  }
  0xc9   : > { %v581_v20 = vsel %vm571_vm2, %v580_v18, %v576_v16  ;;  %v572_v21 = vsel %vm571_vm2, %v570_v19, %v565_v17 }
  0xca   : > { %v853_v22 = vsel %vm852_vm3, %v581_v20, %v572_v21  ;;  %v357_v23 = vpop.xlane.xlu1 %356  ;;  %v354_v24 = vpop.xlane.xlu0 %353  ;;  %1420 = vset.pattern.permute.xlu1 %v1522_v25 }
  0xcb   : > { %v643_v26 = vrot.slane %v357_v23, %v1791_v11  ;;  %v639_v27 = vrot.slane %v354_v24, %v1789_v10  ;;  %979 = vperm.xlu1 %1420, %v1802_v15   ;;  %1424 = vset.pattern.permute.xlu0 %v1523_v28 }
  0xcc   : > { %1049 = vperm.xlu0 %1424, %v1786_v7  }
  0xcd   : > { %v644_v29 = vsel %vm571_vm2, %v643_v26, %v639_v27 }
  0xce   : > { %v363_v30 = vpop.xlane.xlu1 %362  ;;  %v360_v31 = vpop.xlane.xlu0 %359 }
  0xcf   : > { %v652_v32 = vrot.slane %v363_v30, %v1791_v11  ;;  %v648_v33 = vrot.slane %v360_v31, %v1789_v10  ;;  %983 = vperm.xlu1 %1420, %v1786_v7  }
  0xd0   : > { %1053 = vperm.xlu0 %1424, %v1796_v12  }
  0xd1   : > { %v653_v34 = vsel %vm571_vm2, %v652_v32, %v648_v33 }
  0xd2   : > { %v866_v36 = vsel %vm852_vm3, %v653_v34, %v644_v29  ;;  %v321_v37 = vpop.xlane.xlu1 %320  ;;  %v318_v38 = vpop.xlane.xlu0 %317 }
  0xd3   : > { %v589_v39 = vrot.slane %v321_v37, %v1791_v11  ;;  %v585_v40 = vrot.slane %v318_v38, %v1789_v10  ;;  %1421 = vset.pattern.permute.xlu1 %v1520_v62 }
  0xd4   : > { %971 = vperm.xlu1 %1421, %v1825_v35   ;;  %1427 = vset.pattern.permute.xlu0 %v1524_v41 }
  0xd5   : > { %v590_v42 = vsel %vm571_vm2, %v589_v39, %v585_v40  ;;  %1073 = vperm.xlu0 %1427, %v1796_v12  }
  0xd6   : > { %v1835_v43 = vsel %vm854_vm4, %v590_v42, %v853_v22  ;;  %v369_v44 = vpop.xlane.xlu1 %368  ;;  %v366_v45 = vpop.xlane.xlu0 %365 }
  0xd7   : > { %v661_v46 = vrot.slane %v369_v44, %v1791_v11  ;;  %v657_v47 = vrot.slane %v366_v45, %v1789_v10 }
  0xd8   : > { %1422 = vset.pattern.permute.xlu1 %v1522_v25 }
  0xd9   : > { %v662_v62 = vsel %vm571_vm2, %v661_v46, %v657_v47  ;;  %987 = vperm.xlu1 %1422, %v1796_v12  }
  0xda   : > { %v1842_v48 = vsel %vm854_vm4, %v662_v62, %v866_v36  ;;  %v327_v49 = vpop.xlane.xlu1 %326  ;;  %v324_v50 = vpop.xlane.xlu0 %323 }
  0xdb   : > { %v594_v29 = vrot.slane %v324_v50, %v1789_v10 }
  0xdd   : > { %991 = vperm.xlu1 %1422, %v1825_v35  }
  0xde   : > { %v1845_v51 = vpop.xlane.xlu1 %374  ;;  %v1847_v52 = vpop.xlane.xlu0 %371 }
  0xdf   : > { %v670_v40 = vrot.slane %v1845_v51, %v1791_v11 }
  0xe1   : > { %1423 = vset.pattern.permute.xlu1 %v1523_v28 }
  0xe2   : > { %v405_v53 = vpop.xlane.xlu1 %404  ;;  %v402_v54 = vpop.xlane.xlu0 %401  ;;  %1045 = vperm.xlu1 %1423, %v1802_v15  }
  0xe3   : > { %v715_v55 = vrot.slane %v405_v53, %v1791_v11  ;;  %v711_v56 = vrot.slane %v402_v54, %v1789_v10 }
  0xe5   : > { %v716_v57 = vsel %vm571_vm2, %v715_v55, %v711_v56 }
  0xe6   : > { %v411_v58 = vpop.xlane.xlu1 %410  ;;  %v408_v59 = vpop.xlane.xlu0 %407  ;;  %1425 = vset.pattern.permute.xlu1 %v1524_v41 }
  0xe7   : > { %v724_v60 = vrot.slane %v411_v58, %v1791_v11  ;;  %v720_v61 = vrot.slane %v408_v59, %v1789_v10  ;;  %1065 = vperm.xlu1 %1425, %v1802_v15  }
  0xe9   : > { %v725_v63 = vsel %vm571_vm2, %v724_v60, %v720_v61  ;;  %v235_v60 = vld [vmem:[#allocation2] sm:$0xff] }
  0xea   : > { %v1858_v0 = vsel %vm852_vm3, %v725_v63, %v716_v57  ;;  %v333_v1 = vpop.xlane.xlu1 %332  ;;  %v330_v2 = vpop.xlane.xlu0 %329 }
  0xeb   : > { %1069 = vperm.xlu1 %1425, %v1786_v7   ;;  %v607_v30 = vrot.slane %v333_v1, %v1791_v11  ;;  %v603_v31 = vrot.slane %v330_v2, %v1789_v10 }
  0xed   : > { %v608_v42 = vsel %vm571_vm2, %v607_v30, %v603_v31 }
  0xee   : > { %v381_v3 = vpop.xlane.xlu1 %380  ;;  %v378_v4 = vpop.xlane.xlu0 %377 }
  0xef   : > { %1426 = vset.pattern.permute.xlu1 %v1523_v28  ;;  %v598_v28 = vrot.slane %v327_v49, %v1791_v11  ;;  %v679_v44 = vrot.slane %v381_v3, %v1791_v11  ;;  %v675_v45 = vrot.slane %v378_v4, %v1789_v10 }
  0xf0   : > { %1057 = vperm.xlu1 %1426, %v1825_v35  }
  0xf1   : > { %v599_v39 = vsel %vm571_vm2, %v598_v28, %v594_v29  ;;  %v680_v59 = vsel %vm571_vm2, %v679_v44, %v675_v45 }
  0xf2   : > { %v1862_v5 = vpop.xlane.xlu1 %416  ;;  %v1864_v6 = vpop.xlane.xlu0 %413  ;;  %v857_v49 = vsel %vm856_vm5, %v599_v39, %v1835_v43 }
  0xf3   : > { %v859_v56 = vsel %vm858_vm6, %v608_v42, %v857_v49  ;;  %v729_v39 = vrot.slane %v1864_v6, %v1789_v10 }
  0xf4   : > { %1428 = vset.pattern.permute.xlu1 %v1524_v41  ;;  %v666_v41 = vrot.slane %v1847_v52, %v1789_v10 }
  0xf5   : > { %1077 = vperm.xlu1 %1428, %v1825_v35  }
  0xf6   : > { %v339_v8 = vpop.xlane.xlu1 %338  ;;  %v336_v9 = vpop.xlane.xlu0 %335  ;;  %v671_v55 = vsel %vm571_vm2, %v670_v40, %v666_v41 }
  0xf7   : > { %v616_v32 = vrot.slane %v339_v8, %v1791_v11  ;;  %v612_v33 = vrot.slane %v336_v9, %v1789_v10  ;;  %v868_v2 = vsel %vm856_vm5, %v671_v55, %v1842_v48 }
  0xf9   : > { %v617_v46 = vsel %vm571_vm2, %v616_v32, %v612_v33 }
  0xfa   : > { %v387_v13 = vpop.xlane.xlu1 %386  ;;  %v384_v14 = vpop.xlane.xlu0 %383  ;;  %v861_v43 = vsel %vm860_vm7, %v617_v46, %v859_v56 }
  0xfb   : > { %v688_v47 = vrot.slane %v387_v13, %v1791_v11  ;;  %v684_v62 = vrot.slane %v384_v14, %v1789_v10  ;;  %v869_v13 = vsel %vm858_vm6, %v680_v59, %v868_v2 }
  0xfd   : > { %v689_v61 = vsel %vm571_vm2, %v688_v47, %v684_v62 }
  0xfe   : > { %v1867_v16 = vpop.xlane.xlu1 %422  ;;  %v1869_v17 = vpop.xlane.xlu0 %419 }
  0xff   : > { %v742_v42 = vrot.slane %v1867_v16, %v1791_v11  ;;  %v738_v44 = vrot.slane %v1869_v17, %v1789_v10 }
 0x101   : > { %v743_v17 = vsel %vm571_vm2, %v742_v42, %v738_v44 }
 0x102   : > { %v1871_v18 = vpop.xlane.xlu1 %452  ;;  %v1873_v19 = vpop.xlane.xlu0 %449 }
 0x106   : > { %v1875_v20 = vpop.xlane.xlu1 %458  ;;  %v1877_v21 = vpop.xlane.xlu0 %455 }
 0x10a   : > { %v345_v22 = vpop.xlane.xlu1 %344  ;;  %v342_v23 = vpop.xlane.xlu0 %341 }
 0x10b   : > { %v625_v34 = vrot.slane %v345_v22, %v1791_v11  ;;  %v621_v36 = vrot.slane %v342_v23, %v1789_v10 }
 0x10d   : > { %v626_v50 = vsel %vm571_vm2, %v625_v34, %v621_v36  ;;  %v733_v36 = vrot.slane %v1862_v5, %v1791_v11 }
 0x10e   : > { %v393_v24 = vpop.xlane.xlu1 %392  ;;  %v390_v25 = vpop.xlane.xlu0 %389  ;;  %v863_v63 = vsel %vm862_vm8, %v626_v50, %v861_v43  ;;  %v237_v43 = vld [vmem:[#allocation2 + $0x10] sm:$0xff] }
 0x10f   : > { %v697_v51 = vrot.slane %v393_v24, %v1791_v11  ;;  %v693_v52 = vrot.slane %v390_v25, %v1789_v10  ;;  %v870_v24 = vsel %vm860_vm7, %v689_v61, %v869_v13  ;;  %v236_v25 = vld [vmem:[#allocation2 + $0x8] sm:$0xff]  ;;  %v734_v6 = vsel %vm571_vm2, %v733_v36, %v729_v39 }
 0x111   : > { %v698_v3 = vsel %vm571_vm2, %v697_v51, %v693_v52 }
 0x112   : > { %v1879_v26 = vpop.xlane.xlu1 %428  ;;  %v1881_v27 = vpop.xlane.xlu0 %425  ;;  %v871_v28 = vsel %vm862_vm8, %v698_v3, %v870_v24 }
 0x113   : > { %v751_v45 = vrot.slane %v1879_v26, %v1791_v11  ;;  %v747_v46 = vrot.slane %v1881_v27, %v1789_v10  ;;  %v874_v26 = vsel %vm854_vm4, %v734_v6, %v1858_v0  ;;  %v796_v0 = vrot.slane %v1875_v20, %v1791_v11 }
 0x114   : > { %v875_v52 = vsel %vm856_vm5, %v743_v17, %v874_v26 }
 0x115   : > { %v752_v51 = vsel %vm571_vm2, %v751_v45, %v747_v46 }
 0x116   : > { %v1891_v37 = vpop.xlane.xlu1 %464  ;;  %v1893_v38 = vpop.xlane.xlu0 %461  ;;  %v876_v56 = vsel %vm858_vm6, %v752_v51, %v875_v52 }
 0x117   : > { %v805_v2 = vrot.slane %v1891_v37, %v1791_v11  ;;  %v801_v3 = vrot.slane %v1893_v38, %v1789_v10 }
 0x119   : > { %v806_v24 = vsel %vm571_vm2, %v805_v2, %v801_v3 }
 0x11a   : > { %v351_v53 = vpop.xlane.xlu1 %350  ;;  %v348_v54 = vpop.xlane.xlu0 %347 }
 0x11b   : > { %v634_v57 = vrot.slane %v351_v53, %v1791_v11  ;;  %v630_v58 = vrot.slane %v348_v54, %v1789_v10 }
 0x11d   : > { %v635_v1 = vsel %vm571_vm2, %v634_v57, %v630_v58 }
 0x11e   : > { %v865_v4 = vsel %vm864_vm9, %v635_v1, %v863_v63  ;;  %v399_v8 = vpop.xlane.xlu1 %398  ;;  %v396_v9 = vpop.xlane.xlu0 %395  ;;  %v787_v1 = vrot.slane %v1871_v18, %v1791_v11 }
 0x11f   : > { %v891_v14 = vmax.f32 %v235_v60, %v865_v4  ;;  %v706_v22 = vrot.slane %v399_v8, %v1791_v11  ;;  %v702_v23 = vrot.slane %v396_v9, %v1789_v10  ;;  %v792_v60 = vrot.slane %v1877_v21, %v1789_v10 }
 0x120   : > { %v783_v21 = vrot.slane %v1873_v19, %v1789_v10 }
 0x121   : > { %896 = vst.msk [vmem:[#allocation2] sm:$0xff] %vm230_vm1, %v891_v14  ;;  %v707_v48 = vsel %vm571_vm2, %v706_v22, %v702_v23  ;;  %v797_v37 = vsel %vm571_vm2, %v796_v0, %v792_v60  ;;  %v1525_v60 = vmov 4  }
 0x122   : > { %v872_v29 = vsel %vm864_vm9, %v707_v48, %v871_v28  ;;  %v435_v30 = vpop.xlane.xlu1 %434  ;;  %v432_v31 = vpop.xlane.xlu0 %431  ;;  %v788_v28 = vsel %vm571_vm2, %v787_v1, %v783_v21  ;;  %1429 = vset.pattern.permute.xlu1 %v1525_v60  ;;  %1430 = vset.pattern.permute.xlu0 %v1525_v60 }
 0x123   : > { %v892_v32 = vmax.f32 %v236_v25, %v872_v29  ;;  %v760_v47 = vrot.slane %v435_v30, %v1791_v11  ;;  %v756_v5 = vrot.slane %v432_v31, %v1789_v10  ;;  %v880_v31 = vsel %vm852_vm3, %v797_v37, %v788_v28  ;;  %1089 = vperm.xlu1 %1429, %v1802_v15  }
 0x124   : > { %1093 = vperm.xlu0 %1430, %v1786_v7  }
 0x125   : > { %897 = vst.msk [vmem:[#allocation2 + $0x8] sm:$0xff] %vm230_vm1, %v892_v32  ;;  %v761_v27 = vsel %vm571_vm2, %v760_v47, %v756_v5  ;;  %v238_v47 = vld [vmem:[#allocation2 + $0x18] sm:$0xff] }
 0x126   : > { %v471_v33 = vpop.xlane.xlu1 %470  ;;  %v468_v34 = vpop.xlane.xlu0 %467  ;;  %v877_v59 = vsel %vm860_vm7, %v761_v27, %v876_v56 }
 0x127   : > { %v814_v9 = vrot.slane %v471_v33, %v1791_v11  ;;  %v810_v13 = vrot.slane %v468_v34, %v1789_v10  ;;  %v881_v33 = vsel %vm854_vm4, %v806_v24, %v880_v31  ;;  %1097 = vperm.xlu1 %1429, %v1796_v12  }
 0x129   : > { %v815_v48 = vsel %vm571_vm2, %v814_v9, %v810_v13 }
 0x12a   : > { %v441_v40 = vpop.xlane.xlu1 %440  ;;  %v438_v41 = vpop.xlane.xlu0 %437  ;;  %v882_v36 = vsel %vm856_vm5, %v815_v48, %v881_v33 }
 0x12b   : > { %v769_v62 = vrot.slane %v441_v40, %v1791_v11  ;;  %v765_v49 = vrot.slane %v438_v41, %v1789_v10  ;;  %1101 = vperm.xlu1 %1429, %v1825_v35  }
 0x12d   : > { %v770_v53 = vsel %vm571_vm2, %v769_v62, %v765_v49 }
 0x12e   : > { %v477_v16 = vpop.xlane.xlu1 %476  ;;  %v474_v50 = vpop.xlane.xlu0 %473  ;;  %v878_v61 = vsel %vm862_vm8, %v770_v53, %v877_v59  ;;  %v1086_v59 = vld [vmem:[%s2088_s2 + $0x10] sm:$0xff] }
 0x12f   : > { %v823_v18 = vrot.slane %v477_v16, %v1791_v11  ;;  %v819_v22 = vrot.slane %v474_v50, %v1789_v10  ;;  %v2002_v16 = vld [vmem:[#allocation2 + $0x8] sm:$0xff]  ;;  %v2005_v50 = vld [vmem:[#allocation2] sm:$0xff]  ;;  %1340 = vmatprep.mubr.msk.f32.mxu1 %vm1104_vm10, %v1086_v59 }
 0x131   : > { %v824_v32 = vsel %vm571_vm2, %v823_v18, %v819_v22 }
 0x132   : > { %v447_v54 = vpop.xlane.xlu1 %446  ;;  %v444_v55 = vpop.xlane.xlu0 %443  ;;  %v883_v42 = vsel %vm858_vm6, %v824_v32, %v882_v36 }
 0x133   : > { %v778_v57 = vrot.slane %v447_v54, %v1791_v11  ;;  %v774_v58 = vrot.slane %v444_v55, %v1789_v10 }
 0x135   : > { %v779_v63 = vsel %vm571_vm2, %v778_v57, %v774_v58  ;;  %v1084_v58 = vld [vmem:[%s2088_s2] sm:$0xff] }
 0x136   : > { %v879_v4 = vsel %vm864_vm9, %v779_v63, %v878_v61  ;;  %v483_v8 = vpop.xlane.xlu1 %482  ;;  %v480_v20 = vpop.xlane.xlu0 %479  ;;  %1337 = vmatprep.mubr.msk.f32.mxu0 %vm1104_vm10, %v1084_v58 }
 0x137   : > { %v893_v14 = vmax.f32 %v237_v43, %v879_v4  ;;  %v832_v38 = vrot.slane %v483_v8, %v1791_v11  ;;  %v828_v23 = vrot.slane %v480_v20, %v1789_v10 }
 0x139   : > { %898 = vst.msk [vmem:[#allocation2 + $0x10] sm:$0xff] %vm230_vm1, %v893_v14  ;;  %v833_v34 = vsel %vm571_vm2, %v832_v38, %v828_v23 }
 0x13a   : > { %v489_v19 = vpop.xlane.xlu1 %488  ;;  %v486_v25 = vpop.xlane.xlu0 %485  ;;  %v884_v46 = vsel %vm860_vm7, %v833_v34, %v883_v42 }
 0x13b   : > { %v841_v29 = vrot.slane %v489_v19, %v1791_v11  ;;  %v837_v30 = vrot.slane %v486_v25, %v1789_v10 }
 0x13d   : > { %v842_v39 = vsel %vm571_vm2, %v841_v29, %v837_v30 }
 0x13e   : > { %v495_v40 = vpop.xlane.xlu1 %494  ;;  %v492_v41 = vpop.xlane.xlu0 %491  ;;  %v885_v5 = vsel %vm862_vm8, %v842_v39, %v884_v46 }
 0x13f   : > { %v850_v44 = vrot.slane %v495_v40, %v1791_v11  ;;  %v846_v45 = vrot.slane %v492_v41, %v1789_v10  ;;  %v912_v10 = vsel %vm230_vm1, %v2002_v16, 0.0  ;;  %v911_v11 = vsel %vm230_vm1, %v2005_v50, 0.0 }
 0x140   : > { %v2007_v17 = vld [vmem:[#allocation2 + $0x10] sm:$0xff]  ;;  %v913_v26 = vadd.f32 %v912_v10, %v911_v11 }
 0x141   : > { %v851_v6 = vsel %vm571_vm2, %v850_v44, %v846_v45  ;;  %v914_v51 = vsel %vm230_vm1, %v2007_v17, 0.0 }
 0x142   : > { %v886_v62 = vsel %vm864_vm9, %v851_v6, %v885_v5  ;;  %v915_v52 = vadd.f32 %v914_v51, %v913_v26  ;;  %v962_v13 = vpop.permute.xlu1 %961 }
 0x143   : > { %v894_v49 = vmax.f32 %v238_v47, %v886_v62 }
 0x145   : > { %899 = vst.msk [vmem:[#allocation2 + $0x18] sm:$0xff] %vm230_vm1, %v894_v49 }
 0x146   : > { %v967_v23 = vpop.permute.xlu1 %966  ;;  %v957_v36 = vpop.permute.xlu0 %956 }
 0x14a   : > { %v980_v28 = vpop.permute.xlu1 %979 }
 0x14c   : > { %v2015_v27 = vld [vmem:[#allocation2 + $0x18] sm:$0xff] }
 0x14d   : > { %v916_v53 = vsel %vm230_vm1, %v2015_v27, 0.0 }
 0x14e   : > { %v917_v54 = vadd.f32 %v916_v53, %v915_v52  ;;  %v984_v30 = vpop.permute.xlu1 %983 }
 0x150   : > { %v918_v55 = vrot.slane %v917_v54, 4 }
 0x152   : > { %v919_v56 = vadd.f32 %v918_v55, %v917_v54 }
 0x153   : > { %v972_v32 = vpop.permute.xlu1 %971 }
 0x154   : > { %v920_v57 = vrot.slane %v919_v56, 2 }
 0x156   : > { %v921_v43 = vadd.f32 %v920_v57, %v919_v56 }
 0x158   : > { %v922_v0 = vrot.slane %v921_v43, 1  ;;  %v988_v33 = vpop.permute.xlu1 %987 }
 0x15a   : > { %v923_v61 = vadd.f32 %v922_v0, %v921_v43 }
 0x15c   : > { %v925_v63 = vmul.f32 0.03125, %v923_v61  ;;  %v992_v44 = vpop.permute.xlu1 %991 }
 0x15e   : > { %v929_v1 = vsub.f32 %v2015_v27, %v925_v63  ;;  %v926_v2 = vsub.f32 %v2005_v50, %v925_v63  ;;  %v927_v3 = vsub.f32 %v2002_v16, %v925_v63  ;;  %v928_v4 = vsub.f32 %v2007_v17, %v925_v63 }
 0x160   : > { %v930_v8 = vmul.f32 %v926_v2, %v926_v2  ;;  %v931_v20 = vmul.f32 %v927_v3, %v927_v3  ;;  %v932_v21 = vmul.f32 %v928_v4, %v928_v4  ;;  %v933_v15 = vmul.f32 %v929_v1, %v929_v1 }
 0x162   : > { %v934_v7 = vsel %vm230_vm1, %v930_v8, 0.0  ;;  %v935_v9 = vsel %vm230_vm1, %v931_v20, 0.0  ;;  %v937_v14 = vsel %vm230_vm1, %v932_v21, 0.0  ;;  %v939_v22 = vsel %vm230_vm1, %v933_v15, 0.0 }
 0x163   : > { %v936_v12 = vadd.f32 %v935_v9, %v934_v7 }
 0x165   : > { %v938_v18 = vadd.f32 %v937_v14, %v936_v12 }
 0x167   : > { %v940_v37 = vadd.f32 %v939_v22, %v938_v18 }
 0x169   : > { %v941_v38 = vrot.slane %v940_v37, 4 }
 0x16b   : > { %v942_v24 = vadd.f32 %v941_v38, %v940_v37  ;;  %v1046_v38 = vpop.permute.xlu1 %1045 }
 0x16d   : > { %v943_v19 = vrot.slane %v942_v24, 2 }
 0x16f   : > { %v944_v25 = vadd.f32 %v943_v19, %v942_v24 }
 0x171   : > { %v945_v35 = vrot.slane %v944_v25, 1 }
 0x173   : > { %v946_v48 = vadd.f32 %v945_v35, %v944_v25 }
 0x175   : > { %v947_v29 = vmul.f32 0.03125, %v946_v48  ;;  %v1050_v48 = vpop.permute.xlu0 %1049 }
 0x177   : > { %v948_v31 = vadd.f32 1e-05, %v947_v29 }
 0x179   : > { %1431 = vrsqrt.f32 %v948_v31 }
 0x183   : > { %v1432_v34 = vpop.eup %1431 }
 0x184   : > { %v951_v39 = vmul.f32 %v1432_v34, %v927_v3  ;;  %v952_v40 = vmul.f32 %v1432_v34, %v928_v4  ;;  %v953_v41 = vmul.f32 %v1432_v34, %v929_v1  ;;  %v950_v42 = vmul.f32 %v1432_v34, %v926_v2 }
 0x186   : > { %v975_v45 = vmul.f32 %v962_v13, %v951_v39  ;;  %v976_v46 = vmul.f32 %v967_v23, %v952_v40  ;;  %v977_v47 = vmul.f32 %v972_v32, %v953_v41  ;;  %v974_v5 = vmul.f32 %v957_v36, %v950_v42 }
 0x188   : > { %v995_v6 = vadd.f32 %v984_v30, %v975_v45  ;;  %v996_v62 = vadd.f32 %v988_v33, %v976_v46  ;;  %v994_v49 = vadd.f32 %v980_v28, %v974_v5  ;;  %v997_v10 = vadd.f32 %v992_v44, %v977_v47  ;;  %v1066_v28 = vpop.permute.xlu1 %1065  ;;  %v1054_v30 = vpop.permute.xlu0 %1053 }
 0x18a   : > { %v999_v11 = vadd.f32 %v995_v6, %v2002_v16  ;;  %v1000_v51 = vadd.f32 %v996_v62, %v2007_v17  ;;  %v998_v26 = vadd.f32 %v994_v49, %v2005_v50  ;;  %v1001_v54 = vadd.f32 %v997_v10, %v2015_v27 }
 0x18c   : > { %v1003_v52 = vsel %vm230_vm1, %v999_v11, 0.0  ;;  %v1002_v53 = vsel %vm230_vm1, %v998_v26, 0.0  ;;  %v1005_v56 = vsel %vm230_vm1, %v1000_v51, 0.0  ;;  %v1007_v58 = vsel %vm230_vm1, %v1001_v54, 0.0  ;;  %v1070_v29 = vpop.permute.xlu1 %1069  ;;  %v1074_v41 = vpop.permute.xlu0 %1073 }
 0x18d   : > { %v1004_v55 = vadd.f32 %v1003_v52, %v1002_v53 }
 0x18f   : > { %v1006_v57 = vadd.f32 %v1005_v56, %v1004_v55 }
 0x190   : > { %v1058_v31 = vpop.permute.xlu1 %1057 }
 0x191   : > { %v1008_v59 = vadd.f32 %v1007_v58, %v1006_v57 }
 0x193   : > { %v1009_v43 = vrot.slane %v1008_v59, 4 }
 0x194   : > { %v1078_v40 = vpop.permute.xlu1 %1077 }
 0x195   : > { %v1010_v0 = vadd.f32 %v1009_v43, %v1008_v59 }
 0x197   : > { %v1011_v16 = vrot.slane %v1010_v0, 2 }
 0x199   : > { %v1012_v60 = vadd.f32 %v1011_v16, %v1010_v0 }
 0x19b   : > { %v1013_v17 = vrot.slane %v1012_v60, 1 }
 0x19d   : > { %v1014_v61 = vadd.f32 %v1013_v17, %v1012_v60 }
 0x19f   : > { %v1015_v50 = vmul.f32 0.03125, %v1014_v61 }
 0x1a1   : > { %v1019_v63 = vsub.f32 %v1001_v54, %v1015_v50  ;;  %v1016_v1 = vsub.f32 %v998_v26, %v1015_v50  ;;  %v1017_v2 = vsub.f32 %v999_v11, %v1015_v50  ;;  %v1018_v3 = vsub.f32 %v1000_v51, %v1015_v50  ;;  %v1085_v11 = vld [vmem:[%s2088_s2 + $0x8] sm:$0xff]  ;;  %v1087_v51 = vld [vmem:[%s2088_s2 + $0x18] sm:$0xff] }
 0x1a2   : > { %v1090_v26 = vpop.permute.xlu1 %1089 }
 0x1a3   : > { %v1020_v4 = vmul.f32 %v1016_v1, %v1016_v1  ;;  %v1021_v27 = vmul.f32 %v1017_v2, %v1017_v2  ;;  %v1022_v8 = vmul.f32 %v1018_v3, %v1018_v3  ;;  %v1023_v20 = vmul.f32 %v1019_v63, %v1019_v63  ;;  %v1094_v53 = vpop.permute.xlu0 %1093 }
 0x1a5   : > { %v1024_v21 = vsel %vm230_vm1, %v1020_v4, 0.0  ;;  %v1025_v15 = vsel %vm230_vm1, %v1021_v27, 0.0  ;;  %v1027_v9 = vsel %vm230_vm1, %v1022_v8, 0.0  ;;  %v1029_v12 = vsel %vm230_vm1, %v1023_v20, 0.0 }
 0x1a6   : > { %v1026_v7 = vadd.f32 %v1025_v15, %v1024_v21  ;;  %v1098_v52 = vpop.permute.xlu1 %1097 }
 0x1a8   : > { %v1028_v13 = vadd.f32 %v1027_v9, %v1026_v7 }
 0x1aa   : > { %v1030_v14 = vadd.f32 %v1029_v12, %v1028_v13  ;;  %v1102_v54 = vpop.permute.xlu1 %1101 }
 0x1ac   : > { %v1031_v18 = vrot.slane %v1030_v14, 4 }
 0x1ae   : > { %v1032_v22 = vadd.f32 %v1031_v18, %v1030_v14 }
 0x1b0   : > { %v1033_v37 = vrot.slane %v1032_v22, 2 }
 0x1b2   : > { %v1034_v23 = vadd.f32 %v1033_v37, %v1032_v22 }
 0x1b4   : > { %v1035_v24 = vrot.slane %v1034_v23, 1 }
 0x1b6   : > { %v1036_v19 = vadd.f32 %v1035_v24, %v1034_v23 }
 0x1b8   : > { %v1037_v25 = vmul.f32 0.03125, %v1036_v19 }
 0x1ba   : > { %v1038_v35 = vadd.f32 1e-05, %v1037_v25 }
 0x1bc   : > { %1433 = vrsqrt.f32 %v1038_v35 }
 0x1c6   : > { %v1434_v32 = vpop.eup %1433 }
 0x1c7   : > { %v1040_v33 = vmul.f32 %v1434_v32, %v1016_v1  ;;  %v1041_v34 = vmul.f32 %v1434_v32, %v1017_v2  ;;  %v1042_v36 = vmul.f32 %v1434_v32, %v1018_v3  ;;  %v1043_v39 = vmul.f32 %v1434_v32, %v1019_v63 }
 0x1c9   : > { %v1060_v42 = vmul.f32 %v1046_v38, %v1040_v33  ;;  %v1061_v44 = vmul.f32 %v1050_v48, %v1041_v34  ;;  %v1062_v45 = vmul.f32 %v1054_v30, %v1042_v36  ;;  %v1063_v46 = vmul.f32 %v1058_v31, %v1043_v39 }
 0x1cb   : > { %v1080_v47 = vadd.f32 %v1066_v28, %v1060_v42  ;;  %v1081_v5 = vadd.f32 %v1070_v29, %v1061_v44  ;;  %v1083_v6 = vadd.f32 %v1078_v40, %v1063_v46  ;;  %v1082_v62 = vadd.f32 %v1074_v41, %v1062_v45 }
 0x1cd   : > { %v1343_v49 = vpack.c.bf16 %v1081_v5, %v1080_v47  ;;  %v1347_v10 = vpack.c.bf16 %v1083_v6, %v1082_v62 }
 0x1cf   : > { %1344 = vmatprep.subr.bf16.mxu0 %v1343_v49  ;;  %1351 = vmatprep.subr.bf16.mxu1 %v1343_v49 }
 0x1d0   : > { %1346 = vmatpush3.bf16.msra.mxu0 %v1343_v49  ;;  %1353 = vmatpush3.bf16.msra.mxu1 %v1343_v49 }
 0x1d1   : > { %1348 = vmatprep.subr.bf16.mxu0 %v1347_v10  ;;  %1352 = vmatprep.subr.bf16.mxu1 %v1347_v10 }
 0x1d4   : > { %1350 = vmatpush3.bf16.msra.mxu0 %v1347_v10  ;;  %1354 = vmatpush3.bf16.msra.mxu1 %v1347_v10 }
 0x1d7   : > { %1338 = vmatmul.mubr.msk.f32.vlgmr.msra.gmra.mrb[0].mxu0 %vm1104_vm10, %v1085_v11  ;;  %1341 = vmatmul.mubr.msk.f32.vlgmr.msra.gmra.mrb[0].mxu1 %vm1104_vm10, %v1087_v51 }
 0x2aa   : > { %v1339_v55 = vpop.f32.mrb[0].mxu0  ;;  %v1342_v56 = vpop.f32.mrb[0].mxu1 }
 0x2ab   : > { %v1189_v57 = vadd.f32 %v1339_v55, %v1094_v53  ;;  %v1199_v58 = vadd.f32 %v1342_v56, %v1102_v54  ;;  %v1183_v59 = vpop.f32.mrb[1].mxu0  ;;  %v1193_v43 = vpop.f32.mrb[1].mxu1 }
 0x2ac   : > { %v1184_v0 = vadd.f32 %v1183_v59, %v1090_v26  ;;  %v1194_v16 = vadd.f32 %v1193_v43, %v1098_v52 }
 0x2ad   : > { %1203 = vst.msk [vmem:[%s225_s8 + $0x8] sm:$0xff] %vm230_vm1, %v1189_v57  ;;  %1205 = vst.msk [vmem:[%s225_s8 + $0x18] sm:$0xff] %vm230_vm1, %v1199_v58 }
 0x2ae   : > { %1202 = vst.msk [vmem:[%s225_s8] sm:$0xff] %vm230_vm1, %v1184_v0  ;;  %1204 = vst.msk [vmem:[%s225_s8 + $0x10] sm:$0xff] %vm230_vm1, %v1194_v16 }
 0x2af PF: > { %s16_s17 = sadd.s32 1, %s1515_s17   ;;  %s2093_s12 = smov %s1499_s13 }
 0x2b0   : > { %p13_p9 = scmp.ge.s32.totalorder %s16_s17, 4   ;;  %s2094_s13 = smov %s1503_s14 }
 0x2b1   : > { %s2095_s14 = smov %s1595_s24  ;;  %s2096_s15 = smov %s1511_s16 }
 0x2b2   : > { %s2097_s16 = smov %s2099_s19  ;;  %15 = sbr.rel (!%p13_p9) target bundleno = 4 (0x4), region = 80 }
 0x2b9   :  { %1233 = vsyncpa [#allocation4], 1 }
 0x2ba   :  { %1235 = vsyncpa [#allocation4 + $0x1], 1 }

</bundles_post_ra>
